<compile_context>
chip_gen: v6e
topology: v6e:2x2x1
jax: 0.10.0
libtpu: 0.0.40
codegen_flags: <defaults>
</compile_context>

<pallas_src>
import jax
import jax.numpy as jnp
from jax.experimental import pallas as pl
from jax.experimental.pallas import tpu as pltpu  # noqa: F401  (kept for TPU-specific extensions)

# ----------------------------- problem sizes ---------------------------------
B = 2          # batch
L = 8          # sequence length (max)
D_CBOW = 32    # CBOW embedding dim
M = 16         # CMOW matrix dim (embedding dim = M*M = 256)
VOCAB = 50
D_OUT = D_CBOW + M * M  # 288


# ------------------------------- kernel --------------------------------------
def hybrid_kernel(cbow_ref, cmow_ref, cbow_out_ref, cmow_out_ref):
    # cbow_ref     : VMEM (B, L, D_CBOW) f32   (padded positions already zeroed)
    # cmow_ref     : VMEM (B, L, M, M)   f32   (padded positions already identity)
    # cbow_out_ref : VMEM (B, D_CBOW)    f32
    # cmow_out_ref : VMEM (B, M, M)      f32

    # ---- CBOW: sum over sequence positions (masking done in the wrapper) ----
    cbow_out_ref[...] = jnp.sum(cbow_ref[...], axis=1)

    # ---- CMOW: continual matrix multiplication as a log-depth pairwise tree.
    # Matrix product is associative, so ((m0 m1)(m2 m3))((m4 m5)(m6 m7)) equals
    # the left-to-right product; dependency depth is log2(L)=3 instead of L=8,
    # and the B independent chains are traced in the same basic block so their
    # matmuls interleave on the MXU (hides push/pop latency of tiny 16x16 ops).
    for b in range(B):
        level = [cmow_ref[b, l] for l in range(L)]          # list of (M, M)
        while len(level) > 1:
            nxt = [
                jnp.dot(level[i], level[i + 1], preferred_element_type=jnp.float32)
                for i in range(0, len(level) - 1, 2)
            ]
            if len(level) % 2:
                nxt.append(level[-1])
            level = nxt
        cmow_out_ref[b] = level[0]                           # (M, M)


@jax.jit
def hybrid_encoder(sent_len, cbow_emb, cmow_emb):
    """sent_len: (B,) int32, cbow_emb: (B, L, D_CBOW) f32, cmow_emb: (B, L, M, M) f32."""
    # Apply padding semantics once, outside the kernel (cheap fused XLA elementwise):
    #   CBOW padded slot -> zero vector, CMOW padded slot -> identity matrix.
    mask = jnp.arange(L, dtype=jnp.int32)[None, :] < sent_len[:, None]      # (B, L)
    eye = jnp.eye(M, dtype=cmow_emb.dtype)
    cbow_in = jnp.where(mask[:, :, None], cbow_emb, jnp.zeros((), cbow_emb.dtype))
    cmow_in = jnp.where(mask[:, :, None, None], cmow_emb, eye)

    # Single invocation, whole arrays resident in VMEM (total ~18 KB).
    cbow_out, cmow_out = pl.pallas_call(
        hybrid_kernel,
        out_shape=(
            jax.ShapeDtypeStruct((B, D_CBOW), jnp.float32),
            jax.ShapeDtypeStruct((B, M, M), jnp.float32),
        ),
    )(cbow_in, cmow_in)

    # Flatten + concat in the wrapper (layout plumbing, not compute).
    return jnp.concatenate([cbow_out, cmow_out.reshape(B, M * M)], axis=1)

# TODO(synk): at larger B/L, fuse the embedding gather into the kernel via
# scalar-prefetched token ids instead of materializing (B, L, M, M) in HBM.


# --------------------------- pure-JAX reference -------------------------------
def reference(sent_len, cbow_emb, cmow_emb):
    mask = (jnp.arange(L)[None, :] < sent_len[:, None]).astype(jnp.float32)  # (B, L)
    cbow = jnp.sum(cbow_emb * mask[..., None], axis=1)                       # (B, D_CBOW)

    eye = jnp.eye(M, dtype=jnp.float32)
    mats = jnp.where(mask[..., None, None] > 0, cmow_emb, eye)               # (B, L, M, M)
    prods = []
    for b in range(B):
        acc = eye
        for l in range(L):
            acc = acc @ mats[b, l]
        prods.append(acc.reshape(-1))
    cmow = jnp.stack(prods, axis=0)                                          # (B, M*M)
    return jnp.concatenate([cbow, cmow], axis=1)                             # (B, D_OUT)


# ---------------------------------- main --------------------------------------
if __name__ == "__main__":
    key = jax.random.PRNGKey(0)
    k_sent, k_cbow, k_cmow = jax.random.split(key, 3)

    # Deterministic "parameters": embedding tables (index 0 = padding).
    cbow_table = jax.random.normal(k_cbow, (VOCAB, D_CBOW), dtype=jnp.float32) * 0.1
    cbow_table = cbow_table.at[0].set(0.0)  # padding_idx -> zero vector
    # CMOW table initialized near identity (paper's "identity" init strategy).
    eye_flat = jnp.eye(M, dtype=jnp.float32).reshape(-1)
    cmow_table = eye_flat[None, :] + 0.1 * jax.random.normal(
        k_cmow, (VOCAB, M * M), dtype=jnp.float32
    )
    cmow_table = cmow_table.at[0].set(eye_flat)  # padding -> identity matrix

    # Input sentence tuple: word indices + lengths (padded positions = 0).
    sent = jax.random.randint(k_sent, (B, L), 1, VOCAB, dtype=jnp.int32)
    sent_len = jnp.array([L, 5], dtype=jnp.int32)
    pad_mask = jnp.arange(L)[None, :] < sent_len[:, None]
    sent = jnp.where(pad_mask, sent, 0)

    # Glue: embedding lookups (gather) in plain JAX.
    cbow_emb = cbow_table[sent]                          # (B, L, D_CBOW)
    cmow_emb = cmow_table[sent].reshape(B, L, M, M)      # (B, L, M, M)

    out = hybrid_encoder(sent_len, cbow_emb, cmow_emb)
    out = jax.block_until_ready(out)

    ref = reference(sent_len, cbow_emb, cmow_emb)
    assert out.shape == (B, D_OUT), out.shape
    assert jnp.allclose(out, ref, rtol=1e-3, atol=1e-3), (
        float(jnp.max(jnp.abs(out - ref)))
    )
    print("KERNEL_OK")
</pallas_src>

<mosaic_0001>
module attributes {stable_mosaic.version = 11 : i64} {
  func.func @hybrid_kernel(%arg0: memref<2x8x32xf32, #tpu.memory_space<vmem>>, %arg1: memref<2x8x16x16xf32, #tpu.memory_space<vmem>>, %arg2: memref<2x32xf32, #tpu.memory_space<vmem>>, %arg3: memref<2x16x16xf32, #tpu.memory_space<vmem>>) attributes {dimension_semantics = [], scalar_prefetch = 0 : i64, scratch_operands = 0 : i64, tpu.core_type = #tpu.core_type<tc>} {
    %c0 = arith.constant 0 : index
    %c0_0 = arith.constant 0 : index
    %c0_1 = arith.constant 0 : index
    %0 = vector.load %arg0[%c0, %c0_0, %c0_1] : memref<2x8x32xf32, #tpu.memory_space<vmem>>, vector<2x8x32xf32>
    %cst = arith.constant dense<0.000000e+00> : vector<2x32xf32>
    %1 = vector.multi_reduction <add>, %0, %cst [1] : vector<2x8x32xf32> to vector<2x32xf32>
    %c0_2 = arith.constant 0 : index
    %c0_3 = arith.constant 0 : index
    %2 = vector.load %arg2[%c0_2, %c0_3] : memref<2x32xf32, #tpu.memory_space<vmem>>, vector<2x32xf32>
    tpu.vector_store %arg2[%c0_2, %c0_3], %1 {strides = array<i32>} : memref<2x32xf32, #tpu.memory_space<vmem>>, vector<2x32xf32>,
    %c0_4 = arith.constant 0 : index
    %c0_5 = arith.constant 0 : index
    %c0_6 = arith.constant 0 : index
    %c0_7 = arith.constant 0 : index
    %3 = vector.load %arg1[%c0_4, %c0_5, %c0_6, %c0_7] : memref<2x8x16x16xf32, #tpu.memory_space<vmem>>, vector<1x1x16x16xf32>
    %4 = vector.shape_cast %3 : vector<1x1x16x16xf32> to vector<16x16xf32>
    %c0_8 = arith.constant 0 : index
    %c1 = arith.constant 1 : index
    %c0_9 = arith.constant 0 : index
    %c0_10 = arith.constant 0 : index
    %5 = vector.load %arg1[%c0_8, %c1, %c0_9, %c0_10] : memref<2x8x16x16xf32, #tpu.memory_space<vmem>>, vector<1x1x16x16xf32>
    %6 = vector.shape_cast %5 : vector<1x1x16x16xf32> to vector<16x16xf32>
    %c0_11 = arith.constant 0 : index
    %c2 = arith.constant 2 : index
    %c0_12 = arith.constant 0 : index
    %c0_13 = arith.constant 0 : index
    %7 = vector.load %arg1[%c0_11, %c2, %c0_12, %c0_13] : memref<2x8x16x16xf32, #tpu.memory_space<vmem>>, vector<1x1x16x16xf32>
    %8 = vector.shape_cast %7 : vector<1x1x16x16xf32> to vector<16x16xf32>
    %c0_14 = arith.constant 0 : index
    %c3 = arith.constant 3 : index
    %c0_15 = arith.constant 0 : index
    %c0_16 = arith.constant 0 : index
    %9 = vector.load %arg1[%c0_14, %c3, %c0_15, %c0_16] : memref<2x8x16x16xf32, #tpu.memory_space<vmem>>, vector<1x1x16x16xf32>
    %10 = vector.shape_cast %9 : vector<1x1x16x16xf32> to vector<16x16xf32>
    %c0_17 = arith.constant 0 : index
    %c4 = arith.constant 4 : index
    %c0_18 = arith.constant 0 : index
    %c0_19 = arith.constant 0 : index
    %11 = vector.load %arg1[%c0_17, %c4, %c0_18, %c0_19] : memref<2x8x16x16xf32, #tpu.memory_space<vmem>>, vector<1x1x16x16xf32>
    %12 = vector.shape_cast %11 : vector<1x1x16x16xf32> to vector<16x16xf32>
    %c0_20 = arith.constant 0 : index
    %c5 = arith.constant 5 : index
    %c0_21 = arith.constant 0 : index
    %c0_22 = arith.constant 0 : index
    %13 = vector.load %arg1[%c0_20, %c5, %c0_21, %c0_22] : memref<2x8x16x16xf32, #tpu.memory_space<vmem>>, vector<1x1x16x16xf32>
    %14 = vector.shape_cast %13 : vector<1x1x16x16xf32> to vector<16x16xf32>
    %c0_23 = arith.constant 0 : index
    %c6 = arith.constant 6 : index
    %c0_24 = arith.constant 0 : index
    %c0_25 = arith.constant 0 : index
    %15 = vector.load %arg1[%c0_23, %c6, %c0_24, %c0_25] : memref<2x8x16x16xf32, #tpu.memory_space<vmem>>, vector<1x1x16x16xf32>
    %16 = vector.shape_cast %15 : vector<1x1x16x16xf32> to vector<16x16xf32>
    %c0_26 = arith.constant 0 : index
    %c7 = arith.constant 7 : index
    %c0_27 = arith.constant 0 : index
    %c0_28 = arith.constant 0 : index
    %17 = vector.load %arg1[%c0_26, %c7, %c0_27, %c0_28] : memref<2x8x16x16xf32, #tpu.memory_space<vmem>>, vector<1x1x16x16xf32>
    %18 = vector.shape_cast %17 : vector<1x1x16x16xf32> to vector<16x16xf32>
    %cst_29 = arith.constant dense<0.000000e+00> : vector<16x16xf32>
    %19 = tpu.matmul %4, %6, %cst_29 {dimension_numbers = #tpu.dot_dimension_numbers<[1], [0], [0], [1], [0, 0, 1, 1], [], []>} : vector<16x16xf32>, vector<16x16xf32>, vector<16x16xf32> -> vector<16x16xf32>
    %cst_30 = arith.constant dense<0.000000e+00> : vector<16x16xf32>
    %20 = tpu.matmul %8, %10, %cst_30 {dimension_numbers = #tpu.dot_dimension_numbers<[1], [0], [0], [1], [0, 0, 1, 1], [], []>} : vector<16x16xf32>, vector<16x16xf32>, vector<16x16xf32> -> vector<16x16xf32>
    %cst_31 = arith.constant dense<0.000000e+00> : vector<16x16xf32>
    %21 = tpu.matmul %12, %14, %cst_31 {dimension_numbers = #tpu.dot_dimension_numbers<[1], [0], [0], [1], [0, 0, 1, 1], [], []>} : vector<16x16xf32>, vector<16x16xf32>, vector<16x16xf32> -> vector<16x16xf32>
    %cst_32 = arith.constant dense<0.000000e+00> : vector<16x16xf32>
    %22 = tpu.matmul %16, %18, %cst_32 {dimension_numbers = #tpu.dot_dimension_numbers<[1], [0], [0], [1], [0, 0, 1, 1], [], []>} : vector<16x16xf32>, vector<16x16xf32>, vector<16x16xf32> -> vector<16x16xf32>
    %cst_33 = arith.constant dense<0.000000e+00> : vector<16x16xf32>
    %23 = tpu.matmul %19, %20, %cst_33 {dimension_numbers = #tpu.dot_dimension_numbers<[1], [0], [0], [1], [0, 0, 1, 1], [], []>} : vector<16x16xf32>, vector<16x16xf32>, vector<16x16xf32> -> vector<16x16xf32>
    %cst_34 = arith.constant dense<0.000000e+00> : vector<16x16xf32>
    %24 = tpu.matmul %21, %22, %cst_34 {dimension_numbers = #tpu.dot_dimension_numbers<[1], [0], [0], [1], [0, 0, 1, 1], [], []>} : vector<16x16xf32>, vector<16x16xf32>, vector<16x16xf32> -> vector<16x16xf32>
    %cst_35 = arith.constant dense<0.000000e+00> : vector<16x16xf32>
    %25 = tpu.matmul %23, %24, %cst_35 {dimension_numbers = #tpu.dot_dimension_numbers<[1], [0], [0], [1], [0, 0, 1, 1], [], []>} : vector<16x16xf32>, vector<16x16xf32>, vector<16x16xf32> -> vector<16x16xf32>
    %c0_36 = arith.constant 0 : index
    %c0_37 = arith.constant 0 : index
    %c0_38 = arith.constant 0 : index
    %26 = vector.load %arg3[%c0_36, %c0_37, %c0_38] : memref<2x16x16xf32, #tpu.memory_space<vmem>>, vector<1x16x16xf32>
    %27 = vector.shape_cast %26 : vector<1x16x16xf32> to vector<16x16xf32>
    %28 = vector.shape_cast %25 : vector<16x16xf32> to vector<1x16x16xf32>
    tpu.vector_store %arg3[%c0_36, %c0_37, %c0_38], %28 {strides = array<i32>} : memref<2x16x16xf32, #tpu.memory_space<vmem>>, vector<1x16x16xf32>,
    %c1_39 = arith.constant 1 : index
    %c0_40 = arith.constant 0 : index
    %c0_41 = arith.constant 0 : index
    %c0_42 = arith.constant 0 : index
    %29 = vector.load %arg1[%c1_39, %c0_40, %c0_41, %c0_42] : memref<2x8x16x16xf32, #tpu.memory_space<vmem>>, vector<1x1x16x16xf32>
    %30 = vector.shape_cast %29 : vector<1x1x16x16xf32> to vector<16x16xf32>
    %c1_43 = arith.constant 1 : index
    %c1_44 = arith.constant 1 : index
    %c0_45 = arith.constant 0 : index
    %c0_46 = arith.constant 0 : index
    %31 = vector.load %arg1[%c1_43, %c1_44, %c0_45, %c0_46] : memref<2x8x16x16xf32, #tpu.memory_space<vmem>>, vector<1x1x16x16xf32>
    %32 = vector.shape_cast %31 : vector<1x1x16x16xf32> to vector<16x16xf32>
    %c1_47 = arith.constant 1 : index
    %c2_48 = arith.constant 2 : index
    %c0_49 = arith.constant 0 : index
    %c0_50 = arith.constant 0 : index
    %33 = vector.load %arg1[%c1_47, %c2_48, %c0_49, %c0_50] : memref<2x8x16x16xf32, #tpu.memory_space<vmem>>, vector<1x1x16x16xf32>
    %34 = vector.shape_cast %33 : vector<1x1x16x16xf32> to vector<16x16xf32>
    %c1_51 = arith.constant 1 : index
    %c3_52 = arith.constant 3 : index
    %c0_53 = arith.constant 0 : index
    %c0_54 = arith.constant 0 : index
    %35 = vector.load %arg1[%c1_51, %c3_52, %c0_53, %c0_54] : memref<2x8x16x16xf32, #tpu.memory_space<vmem>>, vector<1x1x16x16xf32>
    %36 = vector.shape_cast %35 : vector<1x1x16x16xf32> to vector<16x16xf32>
    %c1_55 = arith.constant 1 : index
    %c4_56 = arith.constant 4 : index
    %c0_57 = arith.constant 0 : index
    %c0_58 = arith.constant 0 : index
    %37 = vector.load %arg1[%c1_55, %c4_56, %c0_57, %c0_58] : memref<2x8x16x16xf32, #tpu.memory_space<vmem>>, vector<1x1x16x16xf32>
    %38 = vector.shape_cast %37 : vector<1x1x16x16xf32> to vector<16x16xf32>
    %c1_59 = arith.constant 1 : index
    %c5_60 = arith.constant 5 : index
    %c0_61 = arith.constant 0 : index
    %c0_62 = arith.constant 0 : index
    %39 = vector.load %arg1[%c1_59, %c5_60, %c0_61, %c0_62] : memref<2x8x16x16xf32, #tpu.memory_space<vmem>>, vector<1x1x16x16xf32>
    %40 = vector.shape_cast %39 : vector<1x1x16x16xf32> to vector<16x16xf32>
    %c1_63 = arith.constant 1 : index
    %c6_64 = arith.constant 6 : index
    %c0_65 = arith.constant 0 : index
    %c0_66 = arith.constant 0 : index
    %41 = vector.load %arg1[%c1_63, %c6_64, %c0_65, %c0_66] : memref<2x8x16x16xf32, #tpu.memory_space<vmem>>, vector<1x1x16x16xf32>
    %42 = vector.shape_cast %41 : vector<1x1x16x16xf32> to vector<16x16xf32>
    %c1_67 = arith.constant 1 : index
    %c7_68 = arith.constant 7 : index
    %c0_69 = arith.constant 0 : index
    %c0_70 = arith.constant 0 : index
    %43 = vector.load %arg1[%c1_67, %c7_68, %c0_69, %c0_70] : memref<2x8x16x16xf32, #tpu.memory_space<vmem>>, vector<1x1x16x16xf32>
    %44 = vector.shape_cast %43 : vector<1x1x16x16xf32> to vector<16x16xf32>
    %cst_71 = arith.constant dense<0.000000e+00> : vector<16x16xf32>
    %45 = tpu.matmul %30, %32, %cst_71 {dimension_numbers = #tpu.dot_dimension_numbers<[1], [0], [0], [1], [0, 0, 1, 1], [], []>} : vector<16x16xf32>, vector<16x16xf32>, vector<16x16xf32> -> vector<16x16xf32>
    %cst_72 = arith.constant dense<0.000000e+00> : vector<16x16xf32>
    %46 = tpu.matmul %34, %36, %cst_72 {dimension_numbers = #tpu.dot_dimension_numbers<[1], [0], [0], [1], [0, 0, 1, 1], [], []>} : vector<16x16xf32>, vector<16x16xf32>, vector<16x16xf32> -> vector<16x16xf32>
    %cst_73 = arith.constant dense<0.000000e+00> : vector<16x16xf32>
    %47 = tpu.matmul %38, %40, %cst_73 {dimension_numbers = #tpu.dot_dimension_numbers<[1], [0], [0], [1], [0, 0, 1, 1], [], []>} : vector<16x16xf32>, vector<16x16xf32>, vector<16x16xf32> -> vector<16x16xf32>
    %cst_74 = arith.constant dense<0.000000e+00> : vector<16x16xf32>
    %48 = tpu.matmul %42, %44, %cst_74 {dimension_numbers = #tpu.dot_dimension_numbers<[1], [0], [0], [1], [0, 0, 1, 1], [], []>} : vector<16x16xf32>, vector<16x16xf32>, vector<16x16xf32> -> vector<16x16xf32>
    %cst_75 = arith.constant dense<0.000000e+00> : vector<16x16xf32>
    %49 = tpu.matmul %45, %46, %cst_75 {dimension_numbers = #tpu.dot_dimension_numbers<[1], [0], [0], [1], [0, 0, 1, 1], [], []>} : vector<16x16xf32>, vector<16x16xf32>, vector<16x16xf32> -> vector<16x16xf32>
    %cst_76 = arith.constant dense<0.000000e+00> : vector<16x16xf32>
    %50 = tpu.matmul %47, %48, %cst_76 {dimension_numbers = #tpu.dot_dimension_numbers<[1], [0], [0], [1], [0, 0, 1, 1], [], []>} : vector<16x16xf32>, vector<16x16xf32>, vector<16x16xf32> -> vector<16x16xf32>
    %cst_77 = arith.constant dense<0.000000e+00> : vector<16x16xf32>
    %51 = tpu.matmul %49, %50, %cst_77 {dimension_numbers = #tpu.dot_dimension_numbers<[1], [0], [0], [1], [0, 0, 1, 1], [], []>} : vector<16x16xf32>, vector<16x16xf32>, vector<16x16xf32> -> vector<16x16xf32>
    %c1_78 = arith.constant 1 : index
    %c0_79 = arith.constant 0 : index
    %c0_80 = arith.constant 0 : index
    %52 = vector.load %arg3[%c1_78, %c0_79, %c0_80] : memref<2x16x16xf32, #tpu.memory_space<vmem>>, vector<1x16x16xf32>
    %53 = vector.shape_cast %52 : vector<1x16x16xf32> to vector<16x16xf32>
    %54 = vector.shape_cast %51 : vector<16x16xf32> to vector<1x16x16xf32>
    tpu.vector_store %arg3[%c1_78, %c0_79, %c0_80], %54 {strides = array<i32>} : memref<2x16x16xf32, #tpu.memory_space<vmem>>, vector<1x16x16xf32>,
    return
  }
}

</mosaic_0001>

<bundles_post_ra>
// kernel: hybrid_encoder.1
= control target key start
LH: loop header
LB: loop body
LE: loop exit
PB: predicated region body
PF: predicated region fallthrough
CT: control target
= control target key end

     0   :  { %vm15_vm0 = vcmask 261120   ;;  %vm60_vm1 = vcmask 130048   ;;  %vm32_vm2 = vcmask 1041409   ;;  %vm35_vm3 = vcmask 254976   ;;  %s1615_s0 = inlined_call_operand.vmem [shape: f32[2,8,32], index: 0, kind: input, shape index: {}]   ;;  %s1616_s1 = inlined_call_operand.vmem [shape: f32[2,8,16,16], index: 1, kind: input, shape index: {}]   ;;  %s1617_s2 = inlined_call_operand.vmem [shape: f32[2,32], index: 2, kind: output, shape index: {0}]   ;;  %s1618_s3 = inlined_call_operand.vmem [shape: f32[2,16,16], index: 3, kind: output, shape index: {1}]  }
   0x1   :  { %v13_v0 = vld [vmem:[%s1615_s0] sm:$0xff]  ;;  %v14_v1 = vld [vmem:[%s1615_s0 + $0x8] sm:$0xff]  ;;  %v1233_v2 = vld [vmem:[%s1616_s1 + $0x18] sm:$0xff] }
   0x2   :  { %v16_v3 = vsel %vm15_vm0, %v13_v0, 0.0  ;;  %v23_v4 = vsel %vm15_vm0, %v14_v1, 0.0  ;;  %1348 = vmatprep.subr.mxu0 %v1233_v2  ;;  %v1237_v5 = vld [vmem:[%s1616_s1 + $0x38] sm:$0xff]  ;;  %v1232_v6 = vld [vmem:[%s1616_s1 + $0x10] sm:$0xff]  ;;  %v37_v10 = vld [vmem:[%s1616_s1] sm:$0xff] }
   0x3   :  { %v1236_v7 = vld [vmem:[%s1616_s1 + $0x30] sm:$0xff]  ;;  %v17_v8 = vrot.slane %v16_v3, 4  ;;  %v24_v9 = vrot.slane %v23_v4, 4  ;;  %1355 = vmatprep.subr.mxu1 %v1237_v5  ;;  %1349 = vmatpush3.msra.mxu0 %v1233_v2  ;;  %v1234_v11 = vld [vmem:[%s1616_s1 + $0x20] sm:$0xff]  ;;  %v38_v12 = vld [vmem:[%s1616_s1 + $0x8] sm:$0xff] }
   0x4   :  { %1356 = vmatpush3.msra.mxu1 %v1237_v5  ;;  %1350 = vmatprep.subr.mxu0 %v1232_v6  ;;  %v1235_v15 = vld [vmem:[%s1616_s1 + $0x28] sm:$0xff]  ;;  %v1241_v16 = vld [vmem:[%s1616_s1 + $0x58] sm:$0xff]  ;;  %v1240_v20 = vld [vmem:[%s1616_s1 + $0x50] sm:$0xff] }
   0x5   :  { %v18_v13 = vadd.f32 %v17_v8, %v16_v3  ;;  %v25_v14 = vadd.f32 %v24_v9, %v23_v4  ;;  %1357 = vmatprep.subr.mxu1 %v1236_v7  ;;  %1351 = vmatpush3.msra.mxu0 %v1232_v6  ;;  %v1245_v17 = vld [vmem:[%s1616_s1 + $0x78] sm:$0xff]  ;;  %v1244_v21 = vld [vmem:[%s1616_s1 + $0x70] sm:$0xff]  ;;  %v1238_v24 = vld [vmem:[%s1616_s1 + $0x40] sm:$0xff] }
   0x6   :  { %1352 = vmatprep.mubr.msk.f32.mxu0 %vm60_vm1, %v37_v10  ;;  %1358 = vmatpush3.msra.mxu1 %v1236_v7  ;;  %v1242_v25 = vld [vmem:[%s1616_s1 + $0x60] sm:$0xff]  ;;  %v1239_v26 = vld [vmem:[%s1616_s1 + $0x48] sm:$0xff]  ;;  %v1263_v41 = vld [vmem:[%s1616_s1 + $0x98] sm:$0xff] }
   0x7   :  { %v19_v18 = vrot.slane %v18_v13, 2  ;;  %v26_v19 = vrot.slane %v25_v14, 2  ;;  %1359 = vmatprep.mubr.msk.f32.mxu1 %vm60_vm1, %v1234_v11  ;;  %1353 = vmatmul.mubr.msk.f32.vlgmr.msra.gmra.mxu0 %vm60_vm1, %v38_v12  ;;  %v1243_v29 = vld [vmem:[%s1616_s1 + $0x68] sm:$0xff]  ;;  %v1262_v42 = vld [vmem:[%s1616_s1 + $0x90] sm:$0xff]  ;;  %v1260_v43 = vld [vmem:[%s1616_s1 + $0x80] sm:$0xff] }
   0x8   :  { %1360 = vmatmul.mubr.msk.f32.vlgmr.msra.gmra.mxu1 %vm60_vm1, %v1235_v15  ;;  %1362 = vmatprep.subr.mxu0 %v1241_v16  ;;  %v1261_v44 = vld [vmem:[%s1616_s1 + $0x88] sm:$0xff]  ;;  %v1271_v45 = vld [vmem:[%s1616_s1 + $0xd8] sm:$0xff]  ;;  %v1270_v46 = vld [vmem:[%s1616_s1 + $0xd0] sm:$0xff] }
   0x9   :  { %v20_v22 = vadd.f32 %v19_v18, %v18_v13  ;;  %v27_v23 = vadd.f32 %v26_v19, %v25_v14  ;;  %1369 = vmatprep.subr.mxu1 %v1245_v17  ;;  %1363 = vmatpush3.msra.mxu0 %v1241_v16  ;;  %v1268_v47 = vld [vmem:[%s1616_s1 + $0xc0] sm:$0xff]  ;;  %v1269_v48 = vld [vmem:[%s1616_s1 + $0xc8] sm:$0xff]  ;;  %v1267_v53 = vld [vmem:[%s1616_s1 + $0xb8] sm:$0xff] }
   0xa   :  { %1370 = vmatpush3.msra.mxu1 %v1245_v17  ;;  %1364 = vmatprep.subr.mxu0 %v1240_v20  ;;  %v1264_v54 = vld [vmem:[%s1616_s1 + $0xa0] sm:$0xff]  ;;  %v1266_v55 = vld [vmem:[%s1616_s1 + $0xb0] sm:$0xff]  ;;  %v1265_v56 = vld [vmem:[%s1616_s1 + $0xa8] sm:$0xff] }
   0xb   :  { %v21_v27 = vrot.slane %v20_v22, 1  ;;  %v28_v28 = vrot.slane %v27_v23, 1  ;;  %1371 = vmatprep.subr.mxu1 %v1244_v21  ;;  %1365 = vmatpush3.msra.mxu0 %v1240_v20  ;;  %v1275_v57 = vld [vmem:[%s1616_s1 + $0xf8] sm:$0xff]  ;;  %v1272_v58 = vld [vmem:[%s1616_s1 + $0xe0] sm:$0xff]  ;;  %v1274_v59 = vld [vmem:[%s1616_s1 + $0xf0] sm:$0xff] }
   0xc   :  { %1366 = vmatprep.mubr.msk.f32.mxu0 %vm60_vm1, %v1238_v24  ;;  %1372 = vmatpush3.msra.mxu1 %v1244_v21  ;;  %v1273_v60 = vld [vmem:[%s1616_s1 + $0xe8] sm:$0xff] }
   0xd   :  { %v22_v30 = vadd.f32 %v21_v27, %v20_v22  ;;  %v29_v31 = vadd.f32 %v28_v28, %v27_v23  ;;  %1373 = vmatprep.mubr.msk.f32.mxu1 %vm60_vm1, %v1242_v25  ;;  %1367 = vmatmul.mubr.msk.f32.vlgmr.msra.gmra.mxu0 %vm60_vm1, %v1239_v26 }
   0xe   :  { %1374 = vmatmul.mubr.msk.f32.vlgmr.msra.gmra.mxu1 %vm60_vm1, %v1243_v29 }
   0xf   :  { %v33_v32 = vsel %vm32_vm2, %v29_v31, %v22_v30 }
  0x10   :  { %36 = vst.msk [vmem:[%s1617_s2] sm:$0x3] %vm35_vm3, %v33_v32 }
  0xc7   :  { %v1354_v33 = vpop.f32.mrf.mxu0 }
  0xc8   :  { %v1361_v34 = vpop.f32.mrf.mxu1 }
  0xc9   :  { %1376 = vmatprep.subr.mxu0 %v1361_v34  ;;  %v133_v35 = vpop.f32.mrf.mxu0 }
  0xca   :  { %v214_v36 = vpop.f32.mrf.mxu1  ;;  %1377 = vmatpush3.msra.mxu0 %v1361_v34  ;;  %1380 = vmatprep.mubr.msk.f32.mxu0 %vm60_vm1, %v133_v35 }
  0xcb   :  { %1378 = vmatprep.subr.mxu0 %v214_v36 }
  0xcc   :  { %1379 = vmatpush3.msra.mxu0 %v214_v36 }
  0xcd   :  { %v1368_v37 = vpop.f32.mrf.mxu0  ;;  %1381 = vmatmul.mubr.msk.f32.vlgmr.msra.gmra.mxu0 %vm60_vm1, %v1354_v33 }
  0xce   :  { %v1375_v38 = vpop.f32.mrf.mxu1 }
  0xcf   :  { %1383 = vmatprep.subr.mxu1 %v1375_v38  ;;  %v295_v39 = vpop.f32.mrf.mxu0 }
  0xd0   :  { %v376_v40 = vpop.f32.mrf.mxu1  ;;  %1384 = vmatpush3.msra.mxu1 %v1375_v38  ;;  %1387 = vmatprep.mubr.msk.f32.mxu1 %vm60_vm1, %v295_v39 }
  0xd1   :  { %1385 = vmatprep.subr.mxu1 %v376_v40 }
  0xd2   :  { %1386 = vmatpush3.msra.mxu1 %v376_v40 }
  0xd3   :  { %1388 = vmatmul.mubr.msk.f32.vlgmr.msra.gmra.mxu1 %vm60_vm1, %v1368_v37  ;;  %1397 = vmatprep.subr.mxu1 %v1263_v41 }
  0xd4   :  { %1398 = vmatpush3.msra.mxu1 %v1263_v41  ;;  %1401 = vmatprep.mubr.msk.f32.mxu1 %vm60_vm1, %v1260_v43 }
  0xd5   :  { %1399 = vmatprep.subr.mxu1 %v1262_v42 }
  0xd6   :  { %1400 = vmatpush3.msra.mxu1 %v1262_v42 }
  0xd7   :  { %1402 = vmatmul.mubr.msk.f32.vlgmr.msra.gmra.mxu1 %vm60_vm1, %v1261_v44  ;;  %1411 = vmatprep.subr.mxu1 %v1271_v45 }
  0xd8   :  { %1412 = vmatpush3.msra.mxu1 %v1271_v45  ;;  %1415 = vmatprep.mubr.msk.f32.mxu1 %vm60_vm1, %v1268_v47 }
  0xd9   :  { %1413 = vmatprep.subr.mxu1 %v1270_v46 }
  0xda   :  { %1414 = vmatpush3.msra.mxu1 %v1270_v46 }
  0xdb   :  { %1416 = vmatmul.mubr.msk.f32.vlgmr.msra.gmra.mxu1 %vm60_vm1, %v1269_v48 }
 0x18d   :  { %v1382_v49 = vpop.f32.mrf.mxu0 }
 0x18f   :  { %v457_v50 = vpop.f32.mrf.mxu0 }
 0x190   :  { %1394 = vmatprep.mubr.msk.f32.mxu0 %vm60_vm1, %v457_v50 }
 0x193   :  { %v1389_v51 = vpop.f32.mrf.mxu1 }
 0x194   :  { %1390 = vmatprep.subr.mxu0 %v1389_v51 }
 0x195   :  { %v538_v52 = vpop.f32.mrf.mxu1  ;;  %1391 = vmatpush3.msra.mxu0 %v1389_v51 }
 0x196   :  { %1392 = vmatprep.subr.mxu0 %v538_v52 }
 0x197   :  { %1393 = vmatpush3.msra.mxu0 %v538_v52  ;;  %v1403_v61 = vpop.f32.mrf.mxu1 }
 0x198   :  { %1395 = vmatmul.mubr.msk.f32.vlgmr.msra.gmra.mxu0 %vm60_vm1, %v1382_v49  ;;  %1404 = vmatprep.subr.mxu0 %v1267_v53 }
 0x199   :  { %1405 = vmatpush3.msra.mxu0 %v1267_v53  ;;  %1408 = vmatprep.mubr.msk.f32.mxu0 %vm60_vm1, %v1264_v54  ;;  %v726_v62 = vpop.f32.mrf.mxu1 }
 0x19a   :  { %1406 = vmatprep.subr.mxu0 %v1266_v55  ;;  %1429 = vmatprep.mubr.msk.f32.mxu1 %vm60_vm1, %v726_v62 }
 0x19b   :  { %1407 = vmatpush3.msra.mxu0 %v1266_v55  ;;  %v1417_v63 = vpop.f32.mrf.mxu1 }
 0x19c   :  { %1409 = vmatmul.mubr.msk.f32.vlgmr.msra.gmra.mxu0 %vm60_vm1, %v1265_v56  ;;  %1418 = vmatprep.subr.mxu0 %v1275_v57 }
 0x19d   :  { %1419 = vmatpush3.msra.mxu0 %v1275_v57  ;;  %1422 = vmatprep.mubr.msk.f32.mxu0 %vm60_vm1, %v1272_v58  ;;  %v888_v0 = vpop.f32.mrf.mxu1 }
 0x19e   :  { %1420 = vmatprep.subr.mxu0 %v1274_v59 }
 0x19f   :  { %1421 = vmatpush3.msra.mxu0 %v1274_v59 }
 0x1a0   :  { %1423 = vmatmul.mubr.msk.f32.vlgmr.msra.gmra.mxu0 %vm60_vm1, %v1273_v60 }
 0x1a1   :  { %1436 = vmatprep.mubr.msk.f32.mxu0 %vm60_vm1, %v888_v0 }
 0x258   :  { %v1396_v1 = vpop.f32.mrf.mxu0 }
 0x259   :  { %629 = vst.msk [vmem:[%s1618_s3 + $0x8] sm:$0xff] %vm60_vm1, %v1396_v1 }
 0x25a   :  { %v619_v2 = vpop.f32.mrf.mxu0 }
 0x25b   :  { %628 = vst.msk [vmem:[%s1618_s3] sm:$0xff] %vm60_vm1, %v619_v2 }
 0x25c   :  { %v1410_v3 = vpop.f32.mrf.mxu0 }
 0x25d   :  { %1425 = vmatprep.subr.mxu1 %v1410_v3 }
 0x25e   :  { %v807_v4 = vpop.f32.mrf.mxu0  ;;  %1426 = vmatpush3.msra.mxu1 %v1410_v3 }
 0x25f   :  { %1427 = vmatprep.subr.mxu1 %v807_v4 }
 0x260   :  { %v1424_v5 = vpop.f32.mrf.mxu0  ;;  %1428 = vmatpush3.msra.mxu1 %v807_v4 }
 0x261   :  { %1430 = vmatmul.mubr.msk.f32.vlgmr.msra.gmra.mxu1 %vm60_vm1, %v1403_v61  ;;  %1432 = vmatprep.subr.mxu0 %v1424_v5 }
 0x262   :  { %v969_v6 = vpop.f32.mrf.mxu0  ;;  %1433 = vmatpush3.msra.mxu0 %v1424_v5 }
 0x263   :  { %1434 = vmatprep.subr.mxu0 %v969_v6 }
 0x264   :  { %1435 = vmatpush3.msra.mxu0 %v969_v6 }
 0x265   :  { %1437 = vmatmul.mubr.msk.f32.vlgmr.msra.gmra.mxu0 %vm60_vm1, %v1417_v63 }
 0x321   :  { %v1431_v7 = vpop.f32.mrf.mxu1 }
 0x323   :  { %v1050_v8 = vpop.f32.mrf.mxu1 }
 0x324   :  { %1443 = vmatprep.mubr.msk.f32.mxu1 %vm60_vm1, %v1050_v8 }
 0x325   :  { %v1438_v9 = vpop.f32.mrf.mxu0 }
 0x326   :  { %1439 = vmatprep.subr.mxu1 %v1438_v9 }
 0x327   :  { %v1131_v10 = vpop.f32.mrf.mxu0  ;;  %1440 = vmatpush3.msra.mxu1 %v1438_v9 }
 0x328   :  { %1441 = vmatprep.subr.mxu1 %v1131_v10 }
 0x329   :  { %1442 = vmatpush3.msra.mxu1 %v1131_v10 }
 0x32a   :  { %1444 = vmatmul.mubr.msk.f32.vlgmr.msra.gmra.mxu1 %vm60_vm1, %v1431_v7 }
 0x3ea   :  { %v1445_v11 = vpop.f32.mrf.mxu1 }
 0x3eb   :  { %1291 = vst.msk [vmem:[%s1618_s3 + $0x18] sm:$0xff] %vm60_vm1, %v1445_v11 }
 0x3ec   :  { %v1212_v12 = vpop.f32.mrf.mxu1 }
 0x3ed   :  { %1290 = vst.msk [vmem:[%s1618_s3 + $0x10] sm:$0xff] %vm60_vm1, %v1212_v12 }

</bundles_post_ra>
